<compile_context>
chip_gen: v7x
topology: tpu7x:2x2x1
jax: 0.10.0
libtpu: 0.0.40
codegen_flags: <defaults>
</compile_context>

<pallas_src>
import functools

import jax
import jax.numpy as jnp
from jax.experimental import pallas as pl
from jax.experimental.pallas import tpu as pltpu

LANE = 128


def mlp_kernel(t_ref, x_ref, w1t_ref, w2t_ref, w3t_ref, w4t_ref, b_ref, o_ref):
    """One batch tile: t,x [1, TN] -> (Linear,Tanh)x3 -> Linear -> o [1, TN]."""
    t = t_ref[...]                        # [1, TN]
    x = x_ref[...]                        # [1, TN]

    b1 = b_ref[:, 0:1]                    # [H, 1]
    b2 = b_ref[:, 1:2]                    # [H, 1]
    b3 = b_ref[:, 2:3]                    # [H, 1]
    b4 = b_ref[0:1, 3:4]                  # [1, 1]

    # Layer 1: W1^T @ cat([t,x]) + b1 as two broadcast outer products (K=2,
    # VPU) -- mathematically identical to cat([t, x], 1) @ W1 + b1.
    h = jnp.tanh(w1t_ref[:, 0:1] * t + w1t_ref[:, 1:2] * x + b1)    # [H, TN]

    # Hidden layers: lane-dense MXU matmuls, full-f32 precision accumulation.
    # TODO(synk): if bundle dumps show ld/st spills at very large TN,
    # strip-mine this chain over 512-1024 lane sub-blocks (EUP stays binding).
    hi = jax.lax.Precision.HIGHEST
    h = jnp.tanh(
        jnp.dot(w2t_ref[...], h, preferred_element_type=jnp.float32,
                precision=hi) + b2)
    h = jnp.tanh(
        jnp.dot(w3t_ref[...], h, preferred_element_type=jnp.float32,
                precision=hi) + b3)

    # Output layer -> [1, TN] (lane-dense store).
    o = jnp.dot(w4t_ref[...], h, preferred_element_type=jnp.float32,
                precision=hi) + b4
    o_ref[...] = o.astype(o_ref.dtype)


def _round_up(v, m):
    return ((v + m - 1) // m) * m


@functools.partial(jax.jit, static_argnames=("tile_n",))
def simple_inference_net(t, x, params, *, tile_n=8192):
    """t, x: [N, 1] float32.  params: (W1,b1,W2,b2,W3,b3,W4,b4).  Returns [N, 1]."""
    w1, b1, w2, b2, w3, b3, w4, b4 = params
    n = t.shape[0]
    h = w1.shape[1]

    # Free [N,1] -> [1,N] views; batch goes on the lane axis. No concat/pad.
    t_row = t.reshape(1, n)
    x_row = x.reshape(1, n)

    # Transposed (tiny) weights so the kernel computes W^T @ h.
    w1t, w2t, w3t, w4t = w1.T, w2.T, w3.T, w4.T      # [H,2],[H,H],[H,H],[1,H]

    # Fuse the four biases into one small VMEM-resident array [H, 4].
    bias = jnp.zeros((h, 4), jnp.float32)
    bias = bias.at[:, 0].set(b1[0]).at[:, 1].set(b2[0]).at[:, 2].set(b3[0])
    bias = bias.at[0, 3].set(b4[0, 0])

    # Batch tile: multiple of 128 lanes; large by default to amortize the
    # per-grid-step overhead, capped so the grid keeps >= ~4 steps when N is
    # big enough (v7x megacore + pipelining). Pallas masks the ragged tail.
    n_rounded = _round_up(n, LANE)
    tn = min(_round_up(tile_n, LANE), n_rounded)
    if n_rounded >= 4 * LANE:
        tn = min(tn, _round_up(pl.cdiv(n_rounded, 4), LANE))
    grid = (pl.cdiv(n, tn),)

    compiler_kwargs = dict(dimension_semantics=("parallel",))
    if tn >= 16384:
        # Headroom for the [H, tn] f32 layer temporaries + double-buffered I/O
        # (v5e's default scoped-VMEM limit is only 16 MiB).
        compiler_kwargs["vmem_limit_bytes"] = int(
            min(60 << 20, 6 * 4 * tn + 5 * h * tn * 4 + (4 << 20)))

    out = pl.pallas_call(
        mlp_kernel,
        out_shape=jax.ShapeDtypeStruct((1, n), jnp.float32),
        grid=grid,
        in_specs=[
            pl.BlockSpec((1, tn), lambda i: (0, i)),           # t tile
            pl.BlockSpec((1, tn), lambda i: (0, i)),           # x tile
            pl.BlockSpec(w1t.shape, lambda i: (0, 0)),         # weights stay resident
            pl.BlockSpec(w2t.shape, lambda i: (0, 0)),
            pl.BlockSpec(w3t.shape, lambda i: (0, 0)),
            pl.BlockSpec(w4t.shape, lambda i: (0, 0)),
            pl.BlockSpec(bias.shape, lambda i: (0, 0)),        # fused biases
        ],
        out_specs=pl.BlockSpec((1, tn), lambda i: (0, i)),
        compiler_params=pltpu.CompilerParams(**compiler_kwargs),
    )(t_row, x_row, w1t, w2t, w3t, w4t, bias)

    return out.reshape(n, 1)


def make_params(hidden=32, key=jax.random.PRNGKey(42)):
    """Deterministic synthetic weights matching the burgers-MLP shapes."""
    dims = [(2, hidden), (hidden, hidden), (hidden, hidden), (hidden, 1)]
    params = []
    for fan_in, fan_out in dims:
        kw, kb, key = jax.random.split(key, 3)
        scale = 1.0 / jnp.sqrt(jnp.float32(fan_in))
        w = jax.random.uniform(kw, (fan_in, fan_out), jnp.float32, -scale, scale)
        b = jax.random.uniform(kb, (1, fan_out), jnp.float32, -scale, scale)
        params += [w, b]
    return tuple(params)


def reference_forward(t, x, params):
    """Pure-JAX reference of net(cat([t, x], dim=1)) in full f32 precision."""
    w1, b1, w2, b2, w3, b3, w4, b4 = params
    hi = jax.lax.Precision.HIGHEST
    z = jnp.concatenate([t, x], axis=1)
    h = jnp.tanh(jnp.dot(z, w1, precision=hi) + b1)
    h = jnp.tanh(jnp.dot(h, w2, precision=hi) + b2)
    h = jnp.tanh(jnp.dot(h, w3, precision=hi) + b3)
    return jnp.dot(h, w4, precision=hi) + b4


if __name__ == "__main__":
    key = jax.random.PRNGKey(0)
    kt, kx = jax.random.split(key)
    params = make_params(hidden=32)

    # Primary small case (N=8, single masked tile) plus a multi-step ragged
    # case (N=1000 -> 4 grid steps with a partial last tile).
    for N in (8, 1000):
        t = jax.random.uniform(kt, (N, 1), jnp.float32)   # time coordinate
        x = jax.random.uniform(kx, (N, 1), jnp.float32)   # space coordinate

        out = jax.block_until_ready(simple_inference_net(t, x, params))
        ref = reference_forward(t, x, params)

        assert out.shape == (N, 1)
        assert jnp.allclose(out, ref, atol=1e-5, rtol=1e-5), (N, out, ref)

    print("KERNEL_OK")
</pallas_src>

<mosaic_0001>
module attributes {stable_mosaic.version = 11 : i64} {
  func.func @mlp_kernel(%arg0: i32, %arg1: memref<1x128xf32, #tpu.memory_space<vmem>>, %arg2: memref<1x128xf32, #tpu.memory_space<vmem>>, %arg3: memref<32x2xf32, #tpu.memory_space<vmem>>, %arg4: memref<32x32xf32, #tpu.memory_space<vmem>>, %arg5: memref<32x32xf32, #tpu.memory_space<vmem>>, %arg6: memref<1x32xf32, #tpu.memory_space<vmem>>, %arg7: memref<32x4xf32, #tpu.memory_space<vmem>>, %arg8: memref<1x128xf32, #tpu.memory_space<vmem>>) attributes {dimension_semantics = [#tpu.dimension_semantics<parallel>], iteration_bounds = array<i64: 1>, scalar_prefetch = 0 : i64, scratch_operands = 0 : i64, tpu.core_type = #tpu.core_type<tc>, window_params = [{transform_indices = @transform_0, window_bounds = array<i64: 1, 128>}, {transform_indices = @transform_1, window_bounds = array<i64: 1, 128>}, {pipeline_mode = #tpu.pipeline_mode<synchronous>, transform_indices = @transform_2, window_bounds = array<i64: 32, 2>}, {pipeline_mode = #tpu.pipeline_mode<synchronous>, transform_indices = @transform_3, window_bounds = array<i64: 32, 32>}, {pipeline_mode = #tpu.pipeline_mode<synchronous>, transform_indices = @transform_4, window_bounds = array<i64: 32, 32>}, {pipeline_mode = #tpu.pipeline_mode<synchronous>, transform_indices = @transform_5, window_bounds = array<i64: 1, 32>}, {pipeline_mode = #tpu.pipeline_mode<synchronous>, transform_indices = @transform_6, window_bounds = array<i64: 32, 4>}, {transform_indices = @transform_7, window_bounds = array<i64: 1, 128>}]} {
    %c0 = arith.constant 0 : index
    %c0_0 = arith.constant 0 : index
    %0 = vector.load %arg1[%c0, %c0_0] : memref<1x128xf32, #tpu.memory_space<vmem>>, vector<1x128xf32>
    %c0_1 = arith.constant 0 : index
    %c0_2 = arith.constant 0 : index
    %1 = vector.load %arg2[%c0_1, %c0_2] : memref<1x128xf32, #tpu.memory_space<vmem>>, vector<1x128xf32>
    %c0_3 = arith.constant 0 : index
    %c0_4 = arith.constant 0 : index
    %2 = vector.load %arg7[%c0_3, %c0_4] : memref<32x4xf32, #tpu.memory_space<vmem>>, vector<32x1xf32>
    %c0_5 = arith.constant 0 : index
    %c1 = arith.constant 1 : index
    %3 = vector.load %arg7[%c0_5, %c1] : memref<32x4xf32, #tpu.memory_space<vmem>>, vector<32x1xf32>
    %c0_6 = arith.constant 0 : index
    %c2 = arith.constant 2 : index
    %4 = vector.load %arg7[%c0_6, %c2] : memref<32x4xf32, #tpu.memory_space<vmem>>, vector<32x1xf32>
    %c0_7 = arith.constant 0 : index
    %c3 = arith.constant 3 : index
    %5 = vector.load %arg7[%c0_7, %c3] : memref<32x4xf32, #tpu.memory_space<vmem>>, vector<1x1xf32>
    %c0_8 = arith.constant 0 : index
    %c0_9 = arith.constant 0 : index
    %6 = vector.load %arg3[%c0_8, %c0_9] : memref<32x2xf32, #tpu.memory_space<vmem>>, vector<32x1xf32>
    %7 = vector.broadcast %6 : vector<32x1xf32> to vector<32x128xf32>
    %8 = vector.broadcast %0 : vector<1x128xf32> to vector<32x128xf32>
    %9 = arith.mulf %7, %8 : vector<32x128xf32>
    %c0_10 = arith.constant 0 : index
    %c1_11 = arith.constant 1 : index
    %10 = vector.load %arg3[%c0_10, %c1_11] : memref<32x2xf32, #tpu.memory_space<vmem>>, vector<32x1xf32>
    %11 = vector.broadcast %10 : vector<32x1xf32> to vector<32x128xf32>
    %12 = vector.broadcast %1 : vector<1x128xf32> to vector<32x128xf32>
    %13 = arith.mulf %11, %12 : vector<32x128xf32>
    %14 = arith.addf %9, %13 : vector<32x128xf32>
    %15 = vector.broadcast %2 : vector<32x1xf32> to vector<32x128xf32>
    %16 = arith.addf %14, %15 : vector<32x128xf32>
    %17 = math.tanh %16 : vector<32x128xf32>
    %c0_12 = arith.constant 0 : index
    %c0_13 = arith.constant 0 : index
    %18 = vector.load %arg4[%c0_12, %c0_13] : memref<32x32xf32, #tpu.memory_space<vmem>>, vector<32x32xf32>
    %cst = arith.constant dense<0.000000e+00> : vector<32x128xf32>
    %19 = tpu.matmul %18, %17, %cst {dimension_numbers = #tpu.dot_dimension_numbers<[1], [0], [0], [1], [0, 0, 1, 1], [], []>, precision = #tpu.contract_precision<fp32>} : vector<32x32xf32>, vector<32x128xf32>, vector<32x128xf32> -> vector<32x128xf32>
    %20 = vector.broadcast %3 : vector<32x1xf32> to vector<32x128xf32>
    %21 = arith.addf %19, %20 : vector<32x128xf32>
    %22 = math.tanh %21 : vector<32x128xf32>
    %c0_14 = arith.constant 0 : index
    %c0_15 = arith.constant 0 : index
    %23 = vector.load %arg5[%c0_14, %c0_15] : memref<32x32xf32, #tpu.memory_space<vmem>>, vector<32x32xf32>
    %cst_16 = arith.constant dense<0.000000e+00> : vector<32x128xf32>
    %24 = tpu.matmul %23, %22, %cst_16 {dimension_numbers = #tpu.dot_dimension_numbers<[1], [0], [0], [1], [0, 0, 1, 1], [], []>, precision = #tpu.contract_precision<fp32>} : vector<32x32xf32>, vector<32x128xf32>, vector<32x128xf32> -> vector<32x128xf32>
    %25 = vector.broadcast %4 : vector<32x1xf32> to vector<32x128xf32>
    %26 = arith.addf %24, %25 : vector<32x128xf32>
    %27 = math.tanh %26 : vector<32x128xf32>
    %c0_17 = arith.constant 0 : index
    %c0_18 = arith.constant 0 : index
    %28 = vector.load %arg6[%c0_17, %c0_18] : memref<1x32xf32, #tpu.memory_space<vmem>>, vector<1x32xf32>
    %cst_19 = arith.constant dense<0.000000e+00> : vector<1x128xf32>
    %29 = tpu.matmul %28, %27, %cst_19 {dimension_numbers = #tpu.dot_dimension_numbers<[1], [0], [0], [1], [0, 0, 1, 1], [], []>, precision = #tpu.contract_precision<fp32>} : vector<1x32xf32>, vector<32x128xf32>, vector<1x128xf32> -> vector<1x128xf32>
    %30 = vector.broadcast %5 : vector<1x1xf32> to vector<1x128xf32>
    %31 = arith.addf %29, %30 : vector<1x128xf32>
    %c0_20 = arith.constant 0 : index
    %c0_21 = arith.constant 0 : index
    %32 = vector.load %arg8[%c0_20, %c0_21] : memref<1x128xf32, #tpu.memory_space<vmem>>, vector<1x128xf32>
    tpu.vector_store %arg8[%c0_20, %c0_21], %31 {strides = array<i32>} : memref<1x128xf32, #tpu.memory_space<vmem>>, vector<1x128xf32>,
    return
  }
  func.func @transform_0(%arg0: i32) -> (i32, i32) {
    %c0_i32 = arith.constant 0 : i32
    %c0_i32_0 = arith.constant 0 : i32
    return %c0_i32, %arg0 : i32, i32
  }
  func.func @transform_1(%arg0: i32) -> (i32, i32) {
    %c0_i32 = arith.constant 0 : i32
    %c0_i32_0 = arith.constant 0 : i32
    return %c0_i32, %arg0 : i32, i32
  }
  func.func @transform_2(%arg0: i32) -> (i32, i32) {
    %c0_i32 = arith.constant 0 : i32
    %c0_i32_0 = arith.constant 0 : i32
    %c0_i32_1 = arith.constant 0 : i32
    return %c0_i32, %c0_i32_0 : i32, i32
  }
  func.func @transform_3(%arg0: i32) -> (i32, i32) {
    %c0_i32 = arith.constant 0 : i32
    %c0_i32_0 = arith.constant 0 : i32
    %c0_i32_1 = arith.constant 0 : i32
    return %c0_i32, %c0_i32_0 : i32, i32
  }
  func.func @transform_4(%arg0: i32) -> (i32, i32) {
    %c0_i32 = arith.constant 0 : i32
    %c0_i32_0 = arith.constant 0 : i32
    %c0_i32_1 = arith.constant 0 : i32
    return %c0_i32, %c0_i32_0 : i32, i32
  }
  func.func @transform_5(%arg0: i32) -> (i32, i32) {
    %c0_i32 = arith.constant 0 : i32
    %c0_i32_0 = arith.constant 0 : i32
    %c0_i32_1 = arith.constant 0 : i32
    return %c0_i32, %c0_i32_0 : i32, i32
  }
  func.func @transform_6(%arg0: i32) -> (i32, i32) {
    %c0_i32 = arith.constant 0 : i32
    %c0_i32_0 = arith.constant 0 : i32
    %c0_i32_1 = arith.constant 0 : i32
    return %c0_i32, %c0_i32_0 : i32, i32
  }
  func.func @transform_7(%arg0: i32) -> (i32, i32) {
    %c0_i32 = arith.constant 0 : i32
    %c0_i32_0 = arith.constant 0 : i32
    return %c0_i32, %arg0 : i32, i32
  }
}

</mosaic_0001>

<bundles_post_ra>
// kernel: simple_inference_net.1
= control target key start
LH: loop header
LB: loop body
LE: loop exit
PB: predicated region body
PF: predicated region fallthrough
CT: control target
= control target key end

     0   :  { %v2555_v2 = vmov 1   ;;  %s2849_s0 = inlined_call_operand.vmem [shape: f32[1,8], index: 0, kind: input, shape index: {}]   ;;  %s2850_s1 = inlined_call_operand.vmem [shape: f32[1,8], index: 1, kind: input, shape index: {}]   ;;  %s2851_s2 = inlined_call_operand.vmem [shape: f32[32,2], index: 2, kind: input, shape index: {}]   ;;  %s2852_s3 = inlined_call_operand.vmem [shape: f32[32,32], index: 3, kind: input, shape index: {}]   ;;  %s2853_s4 = inlined_call_operand.vmem [shape: f32[32,32], index: 4, kind: input, shape index: {}]   ;;  %s2854_s5 = inlined_call_operand.vmem [shape: f32[1,32], index: 5, kind: input, shape index: {}]   ;;  %s2855_s6 = inlined_call_operand.vmem [shape: f32[32,4], index: 6, kind: input, shape index: {}]   ;;  %s2856_s7 = inlined_call_operand.hbm [shape: f32[1,8], index: 7, kind: output, shape index: {}]  }
   0x1   :  { %v36_v0 = vld [vmem:[%s2851_s2 + $0x10] sm:$0xff]  ;;  %v34_v1 = vld [vmem:[%s2851_s2] sm:$0xff]  ;;  %2498 = vset.pattern.permute.xlu0 %v2555_v2  ;;  %2496 = vset.pattern.permute.xlu1 %v2555_v2  ;;  %v35_v3 = vld [vmem:[%s2851_s2 + $0x8] sm:$0xff] }
   0x2   :  { %77 = vperm.xlu0 %2498, %v36_v0   ;;  %69 = vperm.xlu1 %2496, %v34_v1  }
   0x3   :  { %12 = vsyncpa [#allocation3], 0  ;;  %v2556_v4 = vmov 0   ;;  %v37_v5 = vld [vmem:[%s2851_s2 + $0x18] sm:$0xff]  ;;  %v2618_v6 = vld [vmem:[%s2855_s6 + $0x8] sm:$0xff]  ;;  %vm146_vm0 = vcmask 261120  }
   0x4   :  { %v2623_v7 = vld [vmem:[%s2855_s6] sm:$0xff]  ;;  %v2630_v8 = vld [vmem:[%s2855_s6 + $0x10] sm:$0xff]  ;;  %v2637_v9 = vld [vmem:[%s2855_s6 + $0x18] sm:$0xff]  ;;  %vm2559_vm1 = vmmov 0  }
   0x5   :  { %v126_v10 = vld [vmem:[%s2852_s3] sm:$0xff]  ;;  %v127_v41 = vld [vmem:[%s2852_s3 + $0x8] sm:$0xff]  ;;  %v128_v45 = vld [vmem:[%s2852_s3 + $0x10] sm:$0xff] }
   0x6   :  { %2499 = vset.pattern.permute.xlu0 %v2556_v4  ;;  %73 = vperm.xlu1 %2496, %v35_v3   ;;  %v148_v11 = vsel %vm146_vm0, %v126_v10, 0  ;;  %v1936_v23 = vld [vmem:[%s2849_s0] ss:$0 sm:$0xff]  ;;  %v151_v46 = vsel %vm146_vm0, %v127_v41, 0  ;;  %v154_v49 = vsel %vm146_vm0, %v128_v45, 0  ;;  %v129_v52 = vld [vmem:[%s2852_s3 + $0x18] sm:$0xff] }
   0x7   :  { %40 = vperm.xlu0 %2499, %v34_v1   ;;  %v2647_v12 = vand.u32 4294901760, %v148_v11  ;;  %v1937_v25 = vld [vmem:[%s2850_s1] ss:$0 sm:$0xff]  ;;  %v2671_v51 = vand.u32 4294901760, %v151_v46  ;;  %v2676_v54 = vand.u32 4294901760, %v154_v49  ;;  %v157_v58 = vsel %vm146_vm0, %v129_v52, 0 }
   0x8   :  { %v2687_v1 = vand.u32 4294901760, %v157_v58 }
   0x9   :  { %v2650_v13 = vsub.f32 %v148_v11, %v2647_v12  ;;  %v2679_v57 = vsub.f32 %v151_v46, %v2671_v51  ;;  %v2683_v61 = vsub.f32 %v154_v49, %v2676_v54 }
   0xa   :  { %2497 = vset.pattern.permute.xlu1 %v2556_v4 }
   0xb   :  { %45 = vperm.xlu0 %2499, %v35_v3   ;;  %55 = vperm.xlu1 %2497, %v37_v5   ;;  %v230_v14 = vand.u32 4294901760, %v2650_v13  ;;  %v240_v3 = vand.u32 4294901760, %v2679_v57  ;;  %v250_v11 = vand.u32 4294901760, %v2683_v61 }
   0xc   :  { %2100 = vmatprep.mubr.f32.mxu0 %v2650_v13 }
   0xd   :  { %v231_v15 = vsub.f32 %v2650_v13, %v230_v14  ;;  %v777_v13 = vld [vmem:[%s2853_s4] sm:$0xff] }
   0xf   :  { %50 = vperm.xlu0 %2499, %v36_v0   ;;  %2500 = vset.pattern.permute.xlu1 %v2555_v2  ;;  %v232_v16 = vand.u32 4294901760, %v231_v15 }
  0x10   :  { %81 = vperm.xlu1 %2500, %v37_v5  }
  0x11   :  { %2072 = vmatprep.mubr.f32.mxu1 %v232_v16 }
  0x13   :  { %105 = vperm.xlu0 %2499, %v2618_v6  }
  0x14   :  { %2501 = vset.pattern.permute.xlu1 %v2556_v4 }
  0x15   :  { %100 = vperm.xlu1 %2501, %v2623_v7  }
  0x17   :  { %2502 = vset.pattern.permute.xlu0 %v2555_v2 }
  0x18   :  { %131 = vperm.xlu0 %2502, %v2623_v7  }
  0x19   :  { %110 = vperm.xlu1 %2501, %v2630_v8  }
  0x1c   :  { %143 = vperm.xlu0 %2502, %v2637_v9  }
  0x1d   :  { %115 = vperm.xlu1 %2501, %v2637_v9  }
  0x21   :  { %2503 = vset.pattern.permute.xlu1 %v2555_v2 }
  0x22   :  { %135 = vperm.xlu1 %2503, %v2618_v6  }
  0x26   :  { %139 = vperm.xlu1 %2503, %v2630_v8  }
  0x81   :  { %v70_v17 = vpop.permute.xlu1 %69  ;;  %v78_v18 = vpop.permute.xlu0 %77 }
  0x82   :  { %v90_v30 = vmul.f32 %v1937_v25, %v70_v17  ;;  %v92_v37 = vmul.f32 %v1937_v25, %v78_v18  ;;  %v259_v18 = vsub.f32 %v157_v58, %v2687_v1 }
  0x85   :  { %v74_v19 = vpop.permute.xlu1 %73 }
  0x86   :  { %v41_v20 = vpop.permute.xlu0 %40  ;;  %v91_v27 = vmul.f32 %v1937_v25, %v74_v19 }
  0x87   :  { %v64_v28 = vmul.f32 %v1936_v23, %v41_v20  ;;  %v241_v20 = vsub.f32 %v2679_v57, %v240_v3 }
  0x89   :  { %v94_v35 = vadd.f32 %v90_v30, %v64_v28  ;;  %v260_v28 = vand.u32 4294901760, %v259_v18 }
  0x8a   :  { %v46_v21 = vpop.permute.xlu0 %45  ;;  %v56_v22 = vpop.permute.xlu1 %55 }
  0x8b   :  { %v65_v24 = vmul.f32 %v1936_v23, %v46_v21  ;;  %v67_v43 = vmul.f32 %v1936_v23, %v56_v22 }
  0x8d   :  { %v95_v31 = vadd.f32 %v91_v27, %v65_v24  ;;  %v251_v24 = vsub.f32 %v2683_v61, %v250_v11 }
  0x8e   :  { %v51_v26 = vpop.permute.xlu0 %50 }
  0x8f   :  { %v82_v29 = vpop.permute.xlu1 %81  ;;  %v66_v33 = vmul.f32 %v1936_v23, %v51_v26 }
  0x90   :  { %v93_v39 = vmul.f32 %v1937_v25, %v82_v29  ;;  %v242_v29 = vand.u32 4294901760, %v241_v20 }
  0x91   :  { %v96_v40 = vadd.f32 %v92_v37, %v66_v33 }
  0x92   :  { %v106_v32 = vpop.permute.xlu0 %105  ;;  %v97_v47 = vadd.f32 %v93_v39, %v67_v43 }
  0x93   :  { %v119_v34 = vadd.f32 %v106_v32, %v95_v31 }
  0x94   :  { %v101_v36 = vpop.permute.xlu1 %100 }
  0x95   :  { %2507 = vtanh.f32 %v119_v34  ;;  %v118_v38 = vadd.f32 %v101_v36, %v94_v35  ;;  %v252_v34 = vand.u32 4294901760, %v251_v24  ;;  %v261_v36 = vsub.f32 %v259_v18, %v260_v28 }
  0x97   :  { %2509 = vtanh.f32 %v118_v38  ;;  %v132_v52 = vpop.permute.xlu0 %131 }
  0x98   :  { %v111_v42 = vpop.permute.xlu1 %110 }
  0x99   :  { %v120_v44 = vadd.f32 %v111_v42, %v96_v40  ;;  %v262_v40 = vand.u32 4294901760, %v261_v36 }
  0x9b   :  { %2511 = vtanh.f32 %v120_v44 }
  0x9c   :  { %v116_v48 = vpop.permute.xlu1 %115 }
  0x9d   :  { %v121_v50 = vadd.f32 %v116_v48, %v97_v47  ;;  %v2557_v47 = vmov 2  }
  0x9e   :  { %2504 = vset.pattern.permute.xlu1 %v2557_v47  ;;  %2505 = vset.pattern.permute.xlu0 %v2557_v47 }
  0x9f   :  { %v2508_v53 = vpop.eup %2507  ;;  %2513 = vtanh.f32 %v121_v50  ;;  %782 = vperm.xlu1 %2504, %v2623_v7   ;;  %786 = vperm.xlu0 %2505, %v2618_v6   ;;  %v778_v7 = vld [vmem:[%s2853_s4 + $0x8] sm:$0xff] }
  0xa0   :  { %v163_v55 = vand.u32 4294901760, %v2508_v53 }
  0xa1   :  { %v2510_v56 = vpop.eup %2509 }
  0xa2   :  { %v160_v59 = vand.u32 4294901760, %v2510_v56  ;;  %v277_v60 = vsub.f32 %v2508_v53, %v163_v55  ;;  %v136_v53 = vpop.permute.xlu1 %135 }
  0xa3   :  { %790 = vperm.xlu1 %2504, %v2630_v8  }
  0xa4   :  { %v2685_v62 = vpack.c.bf16 %v163_v55, %v160_v59  ;;  %v270_v63 = vsub.f32 %v2510_v56, %v160_v59  ;;  %v278_v0 = vand.u32 4294901760, %v277_v60  ;;  %v144_v56 = vpop.permute.xlu0 %143 }
  0xa5   :  { %v2512_v2 = vpop.eup %2511 }
  0xa6   :  { %v166_v4 = vand.u32 4294901760, %v2512_v2  ;;  %2299 = vmatprep.subr.bf16.mxu1 %v2685_v62  ;;  %v2314_v5 = vpack.c.bf16 %v277_v60, %v270_v63  ;;  %v271_v10 = vand.u32 4294901760, %v270_v63  ;;  %v279_v16 = vsub.f32 %v277_v60, %v278_v0  ;;  %v140_v58 = vpop.permute.xlu1 %139 }
  0xa7   :  { %2301 = vmatpush3.bf16.msra.mxu1 %v2685_v62  ;;  %794 = vperm.xlu1 %2504, %v2637_v9   ;;  %v779_v9 = vld [vmem:[%s2853_s4 + $0x10] sm:$0xff] }
  0xa8   :  { %2315 = vmatprep.subr.bf16.mxu0 %v2314_v5  ;;  %v272_v15 = vsub.f32 %v270_v63, %v271_v10  ;;  %v284_v17 = vsub.f32 %v2512_v2, %v166_v4  ;;  %v280_v26 = vand.u32 4294901760, %v279_v16  ;;  %v2330_v41 = vpack.c.bf16 %v278_v0, %v271_v10 }
  0xa9   :  { %v2514_v19 = vpop.eup %2513  ;;  %2317 = vmatpush3.bf16.msra.mxu0 %v2314_v5  ;;  %v804_v2 = vsel %vm146_vm0, %v779_v9, 0 }
  0xaa   :  { %v169_v21 = vand.u32 4294901760, %v2514_v19  ;;  %v273_v22 = vand.u32 4294901760, %v272_v15  ;;  %v285_v23 = vand.u32 4294901760, %v284_v17  ;;  %v2746_v10 = vand.u32 4294901760, %v804_v2 }
  0xac   :  { %v2302_v25 = vpack.c.bf16 %v169_v21, %v166_v4  ;;  %v291_v27 = vsub.f32 %v2514_v19, %v169_v21  ;;  %v2306_v30 = vpack.c.bf16 %v280_v26, %v273_v22  ;;  %v286_v32 = vsub.f32 %v284_v17, %v285_v23 }
  0xae   :  { %2303 = vmatprep.subr.bf16.mxu1 %v2302_v25  ;;  %v2318_v31 = vpack.c.bf16 %v291_v27, %v284_v17  ;;  %v292_v33 = vand.u32 4294901760, %v291_v27  ;;  %v287_v37 = vand.u32 4294901760, %v286_v32  ;;  %v2755_v17 = vsub.f32 %v804_v2, %v2746_v10 }
  0xaf   :  { %2305 = vmatpush3.bf16.msra.mxu1 %v2302_v25 }
  0xb0   :  { %2307 = vmatprep.subr.bf16.mxu1 %v2306_v30  ;;  %2319 = vmatprep.subr.bf16.mxu0 %v2318_v31  ;;  %v293_v35 = vsub.f32 %v291_v27, %v292_v33  ;;  %v2334_v42 = vpack.c.bf16 %v292_v33, %v285_v23 }
  0xb1   :  { %2321 = vmatpush3.bf16.msra.mxu0 %v2318_v31 }
  0xb2   :  { %2323 = vmatprep.subr.bf16.mxu0 %v2685_v62  ;;  %2073 = vmatmul.mubr.f32.vlgmr.msra.gmra.mrb[0].mxu1 %v242_v29  ;;  %v294_v38 = vand.u32 4294901760, %v293_v35 }
  0xb3   :  { %2309 = vmatpush3.bf16.msra.mxu1 %v2306_v30  ;;  %2075 = vmatprep.mubr.f32.mxu1 %v252_v34 }
  0xb4   :  { %2101 = vmatmul.mubr.f32.vlgmr.msra.gmra.mrb[0].mxu0 %v2679_v57  ;;  %v2310_v39 = vpack.c.bf16 %v294_v38, %v287_v37 }
  0xb5   :  { %2325 = vmatpush3.bf16.msra.mxu0 %v2685_v62  ;;  %2103 = vmatprep.mubr.f32.mxu0 %v2683_v61  ;;  %v801_v61 = vsel %vm146_vm0, %v778_v7, 0 }
  0xb6   :  { %2311 = vmatprep.subr.bf16.mxu1 %v2310_v39  ;;  %2327 = vmatprep.subr.bf16.mxu0 %v2302_v25  ;;  %v2744_v5 = vand.u32 4294901760, %v801_v61 }
  0xb7   :  { %2313 = vmatpush3.bf16.msra.mxu1 %v2310_v39 }
  0xb8   :  { %2104 = vmatmul.mubr.f32.gmra.mrb[2].mxu0 %v259_v18  ;;  %2076 = vmatmul.mubr.f32.gmra.mrb[2].mxu1 %v262_v40  ;;  %v2750_v15 = vsub.f32 %v801_v61, %v2744_v5 }
  0xb9   :  { %2329 = vmatpush3.bf16.msra.mxu0 %v2302_v25  ;;  %2114 = vmatprep.mubr.f32.mxu0 %v230_v14  ;;  %v798_v14 = vsel %vm146_vm0, %v777_v13, 0 }
  0xba   :  { %2331 = vmatprep.subr.bf16.mxu0 %v2330_v41  ;;  %2086 = vmatprep.mubr.f32.mxu1 %v2647_v12  ;;  %v2720_v43 = vand.u32 4294901760, %v798_v14  ;;  %v890_v21 = vand.u32 4294901760, %v2750_v15 }
  0xbc   :  { %2115 = vmatmul.mubr.f32.vlgmr.msra.gmra.mrb[0].mxu0 %v240_v3  ;;  %2087 = vmatmul.mubr.f32.vlgmr.msra.gmra.mrb[0].mxu1 %v2671_v51  ;;  %v2723_v44 = vsub.f32 %v798_v14, %v2720_v43  ;;  %v780_v3 = vld [vmem:[%s2853_s4 + $0x18] sm:$0xff]  ;;  %v891_v31 = vsub.f32 %v2750_v15, %v890_v21 }
  0xbd   :  { %2333 = vmatpush3.bf16.msra.mxu0 %v2330_v41  ;;  %2117 = vmatprep.mubr.f32.mxu0 %v250_v11  ;;  %v807_v11 = vsel %vm146_vm0, %v780_v3, 0 }
  0xbe   :  { %2335 = vmatprep.subr.bf16.mxu0 %v2334_v42  ;;  %2089 = vmatprep.mubr.f32.mxu1 %v2676_v54  ;;  %v880_v45 = vand.u32 4294901760, %v2723_v44  ;;  %v2752_v16 = vand.u32 4294901760, %v807_v11  ;;  %v892_v14 = vand.u32 4294901760, %v891_v31 }
  0xc0   :  { %2118 = vmatmul.mubr.f32.gmra.mrb[2].mxu0 %v260_v28  ;;  %2090 = vmatmul.mubr.f32.gmra.mrb[2].mxu1 %v2687_v1  ;;  %v2759_v23 = vsub.f32 %v807_v11, %v2752_v16 }
  0xc1   :  { %2337 = vmatpush3.bf16.msra.mxu0 %v2334_v42  ;;  %2128 = vmatprep.mubr.f32.mxu0 %v2647_v12 }
  0xc2   :  { %2339 = vmatprep.subr.bf16.mxu0 %v2685_v62  ;;  %v910_v35 = vand.u32 4294901760, %v2759_v23 }
  0xc4   :  { %2129 = vmatmul.mubr.f32.vlgmr.msra.gmra.mrb[0].mxu0 %v2671_v51 }
  0xc5   :  { %2341 = vmatpush3.bf16.msra.mxu0 %v2685_v62  ;;  %2131 = vmatprep.mubr.f32.mxu0 %v2676_v54 }
  0xc6   :  { %2343 = vmatprep.subr.bf16.mxu0 %v2302_v25 }
  0xc8   :  { %2132 = vmatmul.mubr.f32.gmra.mrb[2].mxu0 %v2687_v1 }
  0xc9   :  { %2345 = vmatpush3.bf16.msra.mxu0 %v2302_v25  ;;  %2142 = vmatprep.mubr.f32.mxu0 %v2647_v12  ;;  %v881_v12 = vsub.f32 %v2723_v44, %v880_v45  ;;  %v900_v25 = vand.u32 4294901760, %v2755_v17 }
  0xcb   :  { %v882_v46 = vand.u32 4294901760, %v881_v12  ;;  %v901_v38 = vsub.f32 %v2755_v17, %v900_v25 }
  0xcc   :  { %2143 = vmatmul.mubr.f32.vlgmr.msra.gmra.mrb[0].mxu0 %v2671_v51 }
  0xcd   :  { %2145 = vmatprep.mubr.f32.mxu0 %v2676_v54  ;;  %2156 = vmatprep.mubr.f32.mxu1 %v882_v46 }
  0xd0   :  { %2146 = vmatmul.mubr.f32.gmra.mrb[2].mxu0 %v2687_v1 }
 0x11e   :  { %v787_v9 = vpop.permute.xlu0 %786 }
 0x18f   :  { %v2088_v48 = vpop.f32.mrb[0].mxu1 }
 0x190   :  { %v355_v49 = vpop.f32.mrb[1].mxu1  ;;  %v2430_v54 = vadd.f32 %v2088_v48, %v136_v53  ;;  %v911_v48 = vsub.f32 %v2759_v23, %v910_v35 }
 0x191   :  { %v2432_v55 = vadd.f32 %v355_v49, %v132_v52 }
 0x193   :  { %v2091_v50 = vpop.f32.mrb[2].mxu1 }
 0x194   :  { %v367_v51 = vpop.f32.mrb[3].mxu1  ;;  %v2434_v60 = vadd.f32 %v2091_v50, %v144_v56 }
 0x195   :  { %v2436_v62 = vadd.f32 %v367_v51, %v140_v58  ;;  %v902_v51 = vand.u32 4294901760, %v901_v38 }
 0x19f   :  { %v2144_v57 = vpop.f32.mrb[0].mxu0 }
 0x1a0   :  { %v2431_v6 = vadd.f32 %v2430_v54, %v2144_v57  ;;  %v751_v59 = vpop.f32.mrb[1].mxu0  ;;  %v912_v57 = vand.u32 4294901760, %v911_v48 }
 0x1a1   :  { %v2433_v8 = vadd.f32 %v2432_v55, %v751_v59  ;;  %v783_v59 = vpop.permute.xlu1 %782 }
 0x1a2   :  { %2515 = vtanh.f32 %v2431_v6  ;;  %v2561_v6 = vmov 3  }
 0x1a3   :  { %2517 = vtanh.f32 %v2433_v8  ;;  %v2147_v63 = vpop.f32.mrb[2].mxu0  ;;  %2506 = vset.pattern.permute.xlu0 %v2561_v6 }
 0x1a4   :  { %v2435_v0 = vadd.f32 %v2434_v60, %v2147_v63  ;;  %v763_v1 = vpop.f32.mrb[3].mxu0 }
 0x1a5   :  { %v2437_v4 = vadd.f32 %v2436_v62, %v763_v1  ;;  %v791_v8 = vpop.permute.xlu1 %790 }
 0x1a6   :  { %2519 = vtanh.f32 %v2435_v0 }
 0x1a7   :  { %2521 = vtanh.f32 %v2437_v4 }
 0x1a9   :  { %v795_v0 = vpop.permute.xlu1 %794 }
 0x1ac   :  { %v2516_v18 = vpop.eup %2515 }
 0x1ad   :  { %v2518_v19 = vpop.eup %2517  ;;  %v813_v20 = vand.u32 4294901760, %v2516_v18 }
 0x1ae   :  { %v810_v22 = vand.u32 4294901760, %v2518_v19 }
 0x1af   :  { %v927_v24 = vsub.f32 %v2516_v18, %v813_v20 }
 0x1b0   :  { %v2520_v26 = vpop.eup %2519  ;;  %v2762_v27 = vpack.c.bf16 %v813_v20, %v810_v22  ;;  %v920_v28 = vsub.f32 %v2518_v19, %v810_v22 }
 0x1b1   :  { %v2522_v29 = vpop.eup %2521  ;;  %v819_v30 = vand.u32 4294901760, %v2520_v26  ;;  %v928_v32 = vand.u32 4294901760, %v927_v24 }
 0x1b2   :  { %v816_v33 = vand.u32 4294901760, %v2522_v29  ;;  %2347 = vmatprep.subr.bf16.mxu1 %v2762_v27  ;;  %v921_v34 = vand.u32 4294901760, %v920_v28  ;;  %v2362_v36 = vpack.c.bf16 %v927_v24, %v920_v28 }
 0x1b3   :  { %2349 = vmatpush3.bf16.msra.mxu1 %v2762_v27  ;;  %v929_v37 = vsub.f32 %v927_v24, %v928_v32  ;;  %v941_v39 = vsub.f32 %v2520_v26, %v819_v30 }
 0x1b4   :  { %v2350_v40 = vpack.c.bf16 %v819_v30, %v816_v33  ;;  %v922_v41 = vsub.f32 %v920_v28, %v921_v34  ;;  %v934_v42 = vsub.f32 %v2522_v29, %v816_v33  ;;  %v2378_v13 = vpack.c.bf16 %v928_v32, %v921_v34 }
 0x1b5   :  { %v930_v12 = vand.u32 4294901760, %v929_v37  ;;  %v942_v46 = vand.u32 4294901760, %v941_v39 }
 0x1b6   :  { %2351 = vmatprep.subr.bf16.mxu1 %v2350_v40  ;;  %v923_v47 = vand.u32 4294901760, %v922_v41  ;;  %v935_v49 = vand.u32 4294901760, %v934_v42  ;;  %v2366_v50 = vpack.c.bf16 %v941_v39, %v934_v42 }
 0x1b7   :  { %2353 = vmatpush3.bf16.msra.mxu1 %v2350_v40  ;;  %v943_v52 = vsub.f32 %v941_v39, %v942_v46 }
 0x1b8   :  { %v2354_v53 = vpack.c.bf16 %v930_v12, %v923_v47  ;;  %v936_v54 = vsub.f32 %v934_v42, %v935_v49  ;;  %v2382_v55 = vpack.c.bf16 %v942_v46, %v935_v49 }
 0x1b9   :  { %v944_v56 = vand.u32 4294901760, %v943_v52 }
 0x1ba   :  { %2157 = vmatmul.mubr.f32.vlgmr.msra.gmra.mrb[4].mxu1 %v892_v14  ;;  %2355 = vmatprep.subr.bf16.mxu1 %v2354_v53  ;;  %v937_v7 = vand.u32 4294901760, %v936_v54 }
 0x1bb   :  { %2357 = vmatpush3.bf16.msra.mxu1 %v2354_v53  ;;  %2159 = vmatprep.mubr.f32.mxu1 %v902_v51 }
 0x1bc   :  { %v2358_v58 = vpack.c.bf16 %v944_v56, %v937_v7 }
 0x1be   :  { %2160 = vmatmul.mubr.f32.gmra.mrb[6].mxu1 %v912_v57  ;;  %2359 = vmatprep.subr.bf16.mxu1 %v2358_v58 }
 0x1bf   :  { %2361 = vmatpush3.bf16.msra.mxu1 %v2358_v58  ;;  %2170 = vmatprep.mubr.f32.mxu1 %v2720_v43 }
 0x1c0   :  { %2363 = vmatprep.subr.bf16.mxu1 %v2362_v36 }
 0x1c2   :  { %2171 = vmatmul.mubr.f32.vlgmr.msra.gmra.mrb[4].mxu1 %v2744_v5 }
 0x1c3   :  { %2365 = vmatpush3.bf16.msra.mxu1 %v2362_v36  ;;  %2173 = vmatprep.mubr.f32.mxu1 %v2746_v10 }
 0x1c4   :  { %2367 = vmatprep.subr.bf16.mxu1 %v2366_v50 }
 0x1c6   :  { %2174 = vmatmul.mubr.f32.gmra.mrb[6].mxu1 %v2752_v16 }
 0x1c7   :  { %2369 = vmatpush3.bf16.msra.mxu1 %v2366_v50  ;;  %2184 = vmatprep.mubr.f32.mxu1 %v2723_v44  ;;  %v2558_v44 = vmov 0.0|0.0  }
 0x1c8   :  { %2371 = vmatprep.subr.bf16.mxu1 %v2762_v27  ;;  %2400 = vmatprep.subr.bf16.mxu0 %v2558_v44 }
 0x1ca   :  { %2185 = vmatmul.mubr.f32.vlgmr.msra.gmra.mrb[4].mxu1 %v2750_v15 }
 0x1cb   :  { %2373 = vmatpush3.bf16.msra.mxu1 %v2762_v27  ;;  %2187 = vmatprep.mubr.f32.mxu1 %v2755_v17 }
 0x1cc   :  { %2375 = vmatprep.subr.bf16.mxu1 %v2350_v40 }
 0x1ce   :  { %2188 = vmatmul.mubr.f32.gmra.mrb[6].mxu1 %v2759_v23 }
 0x1cf   :  { %2377 = vmatpush3.bf16.msra.mxu1 %v2350_v40  ;;  %2198 = vmatprep.mubr.f32.mxu1 %v880_v45  ;;  %v2560_v45 = vmov 0.0  }
 0x1d0   :  { %2379 = vmatprep.subr.bf16.mxu1 %v2378_v13  ;;  %2251 = vmatprep.mubr.msk.f32.mxu0 %vm2559_vm1, %v2560_v45 }
 0x1d2   :  { %2199 = vmatmul.mubr.f32.vlgmr.msra.gmra.mrb[4].mxu1 %v890_v21 }
 0x1d3   :  { %2381 = vmatpush3.bf16.msra.mxu1 %v2378_v13  ;;  %2201 = vmatprep.mubr.f32.mxu1 %v900_v25 }
 0x1d4   :  { %2383 = vmatprep.subr.bf16.mxu1 %v2382_v55 }
 0x1d6   :  { %2202 = vmatmul.mubr.f32.gmra.mrb[6].mxu1 %v910_v35 }
 0x1d7   :  { %2385 = vmatpush3.bf16.msra.mxu1 %v2382_v55  ;;  %2212 = vmatprep.mubr.f32.mxu1 %v2720_v43 }
 0x1d8   :  { %2387 = vmatprep.subr.bf16.mxu1 %v2762_v27 }
 0x1da   :  { %2213 = vmatmul.mubr.f32.vlgmr.msra.gmra.mrb[4].mxu1 %v2744_v5 }
 0x1db   :  { %2389 = vmatpush3.bf16.msra.mxu1 %v2762_v27  ;;  %2215 = vmatprep.mubr.f32.mxu1 %v2746_v10 }
 0x1dc   :  { %2391 = vmatprep.subr.bf16.mxu1 %v2350_v40 }
 0x1de   :  { %2216 = vmatmul.mubr.f32.gmra.mrb[6].mxu1 %v2752_v16 }
 0x1df   :  { %2393 = vmatpush3.bf16.msra.mxu1 %v2350_v40  ;;  %2226 = vmatprep.mubr.f32.mxu1 %v2720_v43  ;;  %v33_v43 = vld [vmem:[%s2855_s6] sm:$0x1] }
 0x1e0   :  { %2394 = vmatprep.subr.bf16.mxu1 %v2558_v44  ;;  %1430 = vperm.xlu0 %2506, %v33_v43  }
 0x1e2   :  { %2227 = vmatmul.mubr.f32.vlgmr.msra.gmra.mrb[4].mxu1 %v2744_v5  ;;  %v1427_v5 = vld [vmem:[%s2854_s5] sm:$0x1]  ;;  %s2562_s5 = smov [#allocation2]  }
 0x1e3   :  { %2229 = vmatprep.mubr.f32.mxu1 %v2746_v10  ;;  %v1434_v10 = vsel %vm146_vm0, %v1427_v5, 0  ;;  %s1928_s6 = sshll.u32 %s2562_s5, 4  ;;  %s1929_s6 = int_to_ptr.vmem [resolvable:$true] %s1928_s6 }
 0x1e4   :  { %v2813_v11 = vand.u32 4294901760, %v1434_v10  ;;  %s2531_s2 = scalar_lea.vmem %s1929_s6, 16  ;;  %s2535_s13 = scalar_lea.vmem %s1929_s6, 32 }
 0x1e5   :  { %p2532_p0 = scmp.ne.s32.totalorder %s1929_s6, %s2531_s2  ;;  %p2536_p1 = scmp.lt.s32.totalorder %s1929_s6, %s1929_s6 }
 0x1e6   :  { %2230 = vmatmul.mubr.f32.gmra.mrb[6].mxu1 %v2752_v16  ;;  %v1506_v18 = vsub.f32 %v1434_v10, %v2813_v11  ;;  %p2537_p2 = scmp.lt.s32.totalorder %s2535_s13, %s2531_s2 }
 0x1e7   :  { %2240 = vmatprep.mubr.msk.f32.mxu1 %vm2559_vm1, %v2560_v45 }
 0x1e8   :  { %v1507_v21 = vand.u32 4294901760, %v1506_v18  ;;  %p2538_p3 = por %p2537_p2, %p2536_p1 }
 0x1ea   :  { %v1508_v28 = vsub.f32 %v1506_v18, %v1507_v21  ;;  %p2539_p4 = pnand %p2538_p3, %p2532_p0 }
 0x1ec   :  { %v1509_v40 = vand.u32 4294901760, %v1508_v28 }
 0x25f   :  { %v1431_v53 = vpop.permute.xlu0 %1430 }
 0x2b5   :  { %v2228_v60 = vpop.f32.mrb[4].mxu1 }
 0x2b6   :  { %v2438_v61 = vadd.f32 %v2228_v60, %v787_v9  ;;  %v1401_v62 = vpop.f32.mrb[5].mxu1 }
 0x2b7   :  { %v2439_v63 = vadd.f32 %v1401_v62, %v783_v59 }
 0x2b8   :  { %2523 = vtanh.f32 %v2438_v61 }
 0x2b9   :  { %2525 = vtanh.f32 %v2439_v63  ;;  %v2231_v1 = vpop.f32.mrb[6].mxu1 }
 0x2ba   :  { %v2440_v2 = vadd.f32 %v2231_v1, %v795_v0  ;;  %v1413_v3 = vpop.f32.mrb[7].mxu1 }
 0x2bb   :  { %v2441_v4 = vadd.f32 %v1413_v3, %v791_v8 }
 0x2bc   :  { %2527 = vtanh.f32 %v2440_v2 }
 0x2bd   :  { %2529 = vtanh.f32 %v2441_v4 }
 0x2c2   :  { %v2524_v15 = vpop.eup %2523 }
 0x2c3   :  { %v2526_v16 = vpop.eup %2525  ;;  %v1440_v17 = vand.u32 4294901760, %v2524_v15 }
 0x2c4   :  { %v1437_v19 = vand.u32 4294901760, %v2526_v16 }
 0x2c5   :  { %v1524_v20 = vsub.f32 %v2524_v15, %v1440_v17 }
 0x2c6   :  { %v2528_v22 = vpop.eup %2527  ;;  %v2395_v23 = vpack.c.bf16 %v1440_v17, %v1437_v19  ;;  %v1517_v24 = vsub.f32 %v2526_v16, %v1437_v19 }
 0x2c7   :  { %v2530_v25 = vpop.eup %2529  ;;  %v1446_v26 = vand.u32 4294901760, %v2528_v22  ;;  %v1525_v27 = vand.u32 4294901760, %v1524_v20 }
 0x2c8   :  { %2396 = vmatpush3.bf16.msra.mxu1 %v2395_v23  ;;  %v1443_v29 = vand.u32 4294901760, %v2530_v25  ;;  %v1518_v30 = vand.u32 4294901760, %v1517_v24  ;;  %v2407_v31 = vpack.c.bf16 %v1524_v20, %v1517_v24 }
 0x2c9   :  { %2397 = vmatprep.subr.bf16.mxu1 %v2558_v44  ;;  %v1538_v32 = vsub.f32 %v2528_v22, %v1446_v26  ;;  %v1526_v33 = vsub.f32 %v1524_v20, %v1525_v27 }
 0x2ca   :  { %v2398_v34 = vpack.c.bf16 %v1446_v26, %v1443_v29  ;;  %v1531_v35 = vsub.f32 %v2530_v25, %v1443_v29  ;;  %v1519_v36 = vsub.f32 %v1517_v24, %v1518_v30  ;;  %v2419_v37 = vpack.c.bf16 %v1525_v27, %v1518_v30 }
 0x2cb   :  { %v1527_v38 = vand.u32 4294901760, %v1526_v33  ;;  %v1539_v39 = vand.u32 4294901760, %v1538_v32 }
 0x2cc   :  { %2399 = vmatpush3.bf16.msra.mxu1 %v2398_v34  ;;  %v1520_v41 = vand.u32 4294901760, %v1519_v36  ;;  %v1532_v42 = vand.u32 4294901760, %v1531_v35  ;;  %v2410_v13 = vpack.c.bf16 %v1538_v32, %v1531_v35 }
 0x2cd   :  { %v1540_v14 = vsub.f32 %v1538_v32, %v1539_v39 }
 0x2ce   :  { %v2401_v12 = vpack.c.bf16 %v1527_v38, %v1520_v41  ;;  %v1533_v46 = vsub.f32 %v1531_v35, %v1532_v42  ;;  %v2422_v47 = vpack.c.bf16 %v1539_v39, %v1532_v42 }
 0x2cf   :  { %v1541_v48 = vand.u32 4294901760, %v1540_v14  ;;  %2241 = vmatmul.mubr.f32.vlgmr.msra.gmra.mrb[8].mxu1 %v1509_v40 }
 0x2d0   :  { %2402 = vmatpush3.bf16.msra.mxu0 %v2401_v12  ;;  %v1534_v49 = vand.u32 4294901760, %v1533_v46 }
 0x2d1   :  { %2403 = vmatprep.subr.bf16.mxu0 %v2558_v44 }
 0x2d2   :  { %v2404_v50 = vpack.c.bf16 %v1541_v48, %v1534_v49 }
 0x2d4   :  { %2405 = vmatpush3.bf16.msra.mxu0 %v2404_v50 }
 0x2d5   :  { %2406 = vmatprep.subr.bf16.mxu0 %v2558_v44 }
 0x2d7   :  { %2252 = vmatmul.mubr.f32.vlgmr.msra.gmra.mrb[4].mxu0 %v2813_v11 }
 0x2d8   :  { %2408 = vmatpush3.bf16.msra.mxu0 %v2407_v31  ;;  %2262 = vmatprep.mubr.msk.f32.mxu0 %vm2559_vm1, %v2560_v45 }
 0x2d9   :  { %2409 = vmatprep.subr.bf16.mxu0 %v2558_v44 }
 0x2dc   :  { %2411 = vmatpush3.bf16.msra.mxu0 %v2410_v13 }
 0x2dd   :  { %2412 = vmatprep.subr.bf16.mxu0 %v2558_v44 }
 0x2df   :  { %2263 = vmatmul.mubr.f32.vlgmr.msra.gmra.mrb[4].mxu0 %v1506_v18 }
 0x2e0   :  { %2414 = vmatpush3.bf16.msra.mxu0 %v2395_v23  ;;  %2273 = vmatprep.mubr.msk.f32.mxu0 %vm2559_vm1, %v2560_v45 }
 0x2e1   :  { %2415 = vmatprep.subr.bf16.mxu0 %v2558_v44 }
 0x2e4   :  { %2417 = vmatpush3.bf16.msra.mxu0 %v2398_v34 }
 0x2e5   :  { %2418 = vmatprep.subr.bf16.mxu0 %v2558_v44 }
 0x2e7   :  { %2274 = vmatmul.mubr.f32.vlgmr.msra.gmra.mrb[4].mxu0 %v1507_v21 }
 0x2e8   :  { %2420 = vmatpush3.bf16.msra.mxu0 %v2419_v37  ;;  %2284 = vmatprep.mubr.msk.f32.mxu0 %vm2559_vm1, %v2560_v45 }
 0x2e9   :  { %2421 = vmatprep.subr.bf16.mxu0 %v2558_v44 }
 0x2ec   :  { %2423 = vmatpush3.bf16.msra.mxu0 %v2422_v47 }
 0x2ed   :  { %2424 = vmatprep.subr.bf16.mxu0 %v2558_v44 }
 0x2ef   :  { %2285 = vmatmul.mubr.f32.vlgmr.msra.gmra.mrb[4].mxu0 %v2813_v11 }
 0x2f0   :  { %2426 = vmatpush3.bf16.msra.mxu0 %v2395_v23  ;;  %2295 = vmatprep.mubr.msk.f32.mxu0 %vm2559_vm1, %v2560_v45 }
 0x2f1   :  { %2427 = vmatprep.subr.bf16.mxu0 %v2558_v44 }
 0x2f4   :  { %2429 = vmatpush3.bf16.msra.mxu0 %v2398_v34 }
 0x2f7   :  { %2296 = vmatmul.mubr.f32.vlgmr.msra.gmra.mrb[4].mxu0 %v2813_v11 }
 0x3a2   :  { %v1511_v51 = vpop.f32.mrb[8].mxu1 }
 0x3a3   :  { %v2242_v52 = vpop.f32.mrb[9].mxu1  ;;  %v1512_v54 = vadd.f32 %v1511_v51, %v1431_v53 }
 0x3ca   :  { %v1917_v55 = vpop.f32.mrb[4].mxu0 }
 0x3cb   :  { %v2443_v56 = vadd.f32 %v1917_v55, %v1512_v54  ;;  %v2297_v57 = vpop.f32.mrb[5].mxu0 }
 0x3cd   :  { %1921 = vst [vmem:[#allocation2] sm:$0x1] %v2443_v56 }
 0x3ce   :  { %2542 = shalt.err (!%p2539_p4)
}
 0x3cf   :  { %s2543_s16 = scalar_lea.hbm %s2856_s7, 16 }
 0x3d0   :  { %p2544_p5 = scmp.ne.s32.totalorder %s2856_s7, %s2543_s16  ;;  %p2547_p6 = scmp.lt.u32.totalorder %s2543_s16, %s2856_s7 }
 0x3d2   :  { %p2549_p7 = pnand %p2547_p6, %p2544_p5 }
 0x3d4   :  { %2552 = shalt.err (!%p2549_p7)
}
 0x3d5   :  { %1931 = dma.vmem_to_hbm [thread:$0]  %s1929_s6, 16, %s2856_s7, [#allocation3]  }
 0x3d6   :  { %2553 = dma.done.wait [#allocation3], 16  }
 0x3d7   :  { %2554 = vsyncadd [#allocation3], 4294967280 }
 0x3d8   :  { %1935 = vsyncpa [#allocation3], 1 }

</bundles_post_ra>
